<compile_context>
chip_gen: v7x
topology: tpu7x:2x2x1
jax: 0.10.0
libtpu: 0.0.40
codegen_flags: <defaults>
</compile_context>

<pallas_src>
import functools
import math

import jax
import jax.numpy as jnp
from jax.experimental import pallas as pl
from jax.experimental.pallas import tpu as pltpu


# Below this many bytes a Pallas dispatch is pure launch overhead plus an
# un-fused HBM round trip; let XLA fuse the elementwise add instead.
_PALLAS_MIN_BYTES = 1 << 20

# Conservative per-grid-step VMEM budget for the auto-pipelined buffers.
# 10 MiB fits inside the *default* scoped-VMEM limit on every generation
# (16 MiB v5e, 32 MiB v6e/v7x), so no vmem_limit_bytes override is required.
_VMEM_BUDGET_BYTES = 10 * 1024 * 1024


def _choose_tile_s(S: int, B: int, D: int, itemsize: int) -> int:
    """Largest seq-tile whose double-buffered working set fits the VMEM budget."""
    # Per grid step Pallas holds ~2 buffers each for the x tile, the out tile
    # and the (much smaller) pe tile.
    per_row = (2 * B * D + 2 * B * D + 2 * D) * itemsize
    tile = max(1, _VMEM_BUDGET_BYTES // per_row)
    if tile >= 8:
        tile = (tile // 8) * 8          # friendly sublane granularity
    return min(tile, S)


def _pos_enc_kernel(seed_ref, x_ref, pe_ref, o_ref, *, p, train):
    # x_ref: (TILE_S, B, D); pe_ref: (TILE_S, 1, D) — already block-shaped, so
    # the add is a plain sublane broadcast with no in-kernel reshape.
    y = x_ref[...] + pe_ref[...]

    if train and p > 0.0:
        if p >= 1.0:
            y = jnp.zeros_like(y)
        else:
            # Inverted dropout (torch.nn.Dropout train-mode semantics).  The seed
            # is a runtime scalar (SMEM, scalar-prefetch) mixed with the grid
            # coordinate so each sequence tile draws an independent mask and a
            # new seed never forces a recompile.
            # TODO(synk): randomness comes from the TPU hardware PRNG, so the bit
            # pattern differs from PyTorch's RNG stream (semantics match).
            pltpu.prng_seed(seed_ref[0] + pl.program_id(0))
            bits = pltpu.prng_random_bits(y.shape)
            if bits.dtype != jnp.uint32:
                bits = pltpu.bitcast(bits, jnp.uint32)
            threshold = jnp.uint32(int(p * (2.0 ** 32)))
            keep = bits >= threshold
            scale = jnp.asarray(1.0 / (1.0 - p), dtype=y.dtype)
            y = jnp.where(keep, y * scale, jnp.zeros_like(y))

    o_ref[...] = y.astype(o_ref.dtype)


def make_positional_encoding_table(max_seq_len: int, d_model: int) -> jnp.ndarray:
    """Sinusoidal table identical to the PyTorch __init__ buffer (singleton
    broadcast dim squeezed): shape (max_seq_len, d_model)."""
    position = jnp.arange(max_seq_len, dtype=jnp.float32)[:, None]          # (L, 1)
    div_term = jnp.exp(
        jnp.arange(0, d_model, 2, dtype=jnp.float32) * (-math.log(10000.0) / d_model)
    )                                                                        # (D/2,)
    pe = jnp.zeros((max_seq_len, d_model), dtype=jnp.float32)
    pe = pe.at[:, 0::2].set(jnp.sin(position * div_term))
    pe = pe.at[:, 1::2].set(jnp.cos(position * div_term))
    return pe


def positional_encoder(x: jnp.ndarray,
                       pe: jnp.ndarray,
                       *,
                       dropout_p: float = 0.1,
                       train: bool = False,
                       seed: int = 0,
                       tile_s: int | None = None,
                       force_pallas: bool = False) -> jnp.ndarray:
    """x: (seq_len, batch, d_model); pe: (max_seq_len, d_model)."""
    S, B, D = x.shape
    if S > pe.shape[0]:
        raise ValueError(
            f"seq_len {S} exceeds max_seq_len {pe.shape[0]} of the PE table")

    pe_slice = pe[:S].astype(x.dtype)[:, None, :]      # (S, 1, D), block-shaped

    # Tiny inputs: skip the kernel entirely and let XLA fuse the add.
    if not force_pallas and x.size * x.dtype.itemsize < _PALLAS_MIN_BYTES:
        y = x + pe_slice
        if train and dropout_p > 0.0:
            if dropout_p >= 1.0:
                return jnp.zeros_like(y)
            keep = jax.random.bernoulli(
                jax.random.PRNGKey(seed), 1.0 - dropout_p, y.shape)
            y = jnp.where(keep, y / (1.0 - dropout_p), 0.0)
        return y.astype(x.dtype)

    TILE_S = tile_s if tile_s is not None else _choose_tile_s(S, B, D, x.dtype.itemsize)
    TILE_S = max(1, min(TILE_S, S))
    grid = (pl.cdiv(S, TILE_S),)

    seed_arr = jnp.asarray([seed], dtype=jnp.int32)
    kernel = functools.partial(_pos_enc_kernel, p=float(dropout_p), train=bool(train))

    return pl.pallas_call(
        kernel,
        out_shape=jax.ShapeDtypeStruct((S, B, D), x.dtype),
        grid_spec=pltpu.PrefetchScalarGridSpec(
            num_scalar_prefetch=1,                     # seed lands in SMEM
            grid=grid,
            in_specs=[
                pl.BlockSpec((TILE_S, B, D), lambda i, seed_ref: (i, 0, 0)),
                pl.BlockSpec((TILE_S, 1, D), lambda i, seed_ref: (i, 0, 0)),
            ],
            out_specs=pl.BlockSpec((TILE_S, B, D), lambda i, seed_ref: (i, 0, 0)),
        ),
        compiler_params=pltpu.CompilerParams(
            # Tiles are independent -> shard across both TCs on v7x; neutral on
            # single-TC v5e/v6e.
            dimension_semantics=("parallel",),
        ),
    )(seed_arr, x, pe_slice)


if __name__ == "__main__":
    # Small shapes consistent with the module (max_seq_len default 14); d_model
    # chosen as a multiple of 128 so output stores are lane-dense (the module's
    # default d_model=512 is too).
    max_seq_len = 14
    d_model = 128
    seq_len = 8
    batch = 2

    key = jax.random.PRNGKey(0)
    x = jax.random.normal(key, (seq_len, batch, d_model), dtype=jnp.float32)
    pe = make_positional_encoding_table(max_seq_len, d_model)

    ref = x + pe[:seq_len][:, None, :]

    # Eval-mode forward (dropout is the identity), single-tile grid.
    out = positional_encoder(x, pe, dropout_p=0.1, train=False, force_pallas=True)
    out = jax.block_until_ready(out)
    assert out.shape == (seq_len, batch, d_model)
    assert jnp.allclose(out, ref, atol=1e-6), "mismatch vs reference (single tile)"

    # Same computation with a forced small tile to exercise the multi-block,
    # pipelined grid path (grid = 2 over the sequence axis).
    out_tiled = positional_encoder(x, pe, dropout_p=0.1, train=False,
                                   tile_s=4, force_pallas=True)
    out_tiled = jax.block_until_ready(out_tiled)
    assert jnp.allclose(out_tiled, ref, atol=1e-6), "mismatch vs reference (gridded)"

    print("KERNEL_OK")
</pallas_src>

<mosaic_0001>
module attributes {stable_mosaic.version = 11 : i64} {
  func.func @_pos_enc_kernel(%arg0: i32, %arg1: memref<1xi32, #tpu.memory_space<smem>>, %arg2: memref<8x2x128xf32, #tpu.memory_space<vmem>>, %arg3: memref<8x1x128xf32, #tpu.memory_space<vmem>>, %arg4: memref<8x2x128xf32, #tpu.memory_space<vmem>>) attributes {dimension_semantics = [#tpu.dimension_semantics<parallel>], iteration_bounds = array<i64: 1>, scalar_prefetch = 1 : i64, scratch_operands = 0 : i64, tpu.core_type = #tpu.core_type<tc>, window_params = [{transform_indices = @transform_0, window_bounds = array<i64: 8, 2, 128>}, {transform_indices = @transform_1, window_bounds = array<i64: 8, 1, 128>}, {transform_indices = @transform_2, window_bounds = array<i64: 8, 2, 128>}]} {
    %c0 = arith.constant 0 : index
    %c0_0 = arith.constant 0 : index
    %c0_1 = arith.constant 0 : index
    %0 = vector.load %arg2[%c0, %c0_0, %c0_1] : memref<8x2x128xf32, #tpu.memory_space<vmem>>, vector<8x2x128xf32>
    %c0_2 = arith.constant 0 : index
    %c0_3 = arith.constant 0 : index
    %c0_4 = arith.constant 0 : index
    %1 = vector.load %arg3[%c0_2, %c0_3, %c0_4] : memref<8x1x128xf32, #tpu.memory_space<vmem>>, vector<8x1x128xf32>
    %2 = vector.broadcast %1 : vector<8x1x128xf32> to vector<8x2x128xf32>
    %3 = arith.addf %0, %2 : vector<8x2x128xf32>
    %c0_5 = arith.constant 0 : index
    %c0_6 = arith.constant 0 : index
    %c0_7 = arith.constant 0 : index
    %4 = vector.load %arg4[%c0_5, %c0_6, %c0_7] : memref<8x2x128xf32, #tpu.memory_space<vmem>>, vector<8x2x128xf32>
    tpu.vector_store %arg4[%c0_5, %c0_6, %c0_7], %3 {strides = array<i32>} : memref<8x2x128xf32, #tpu.memory_space<vmem>>, vector<8x2x128xf32>,
    return
  }
  func.func @transform_0(%arg0: i32, %arg1: memref<1xi32, #tpu.memory_space<smem>>) -> (i32, i32, i32) {
    %c0_i32 = arith.constant 0 : i32
    %c0_i32_0 = arith.constant 0 : i32
    %c0_i32_1 = arith.constant 0 : i32
    return %arg0, %c0_i32, %c0_i32_0 : i32, i32, i32
  }
  func.func @transform_1(%arg0: i32, %arg1: memref<1xi32, #tpu.memory_space<smem>>) -> (i32, i32, i32) {
    %c0_i32 = arith.constant 0 : i32
    %c0_i32_0 = arith.constant 0 : i32
    %c0_i32_1 = arith.constant 0 : i32
    return %arg0, %c0_i32, %c0_i32_0 : i32, i32, i32
  }
  func.func @transform_2(%arg0: i32, %arg1: memref<1xi32, #tpu.memory_space<smem>>) -> (i32, i32, i32) {
    %c0_i32 = arith.constant 0 : i32
    %c0_i32_0 = arith.constant 0 : i32
    %c0_i32_1 = arith.constant 0 : i32
    return %arg0, %c0_i32, %c0_i32_0 : i32, i32, i32
  }
}

</mosaic_0001>

<bundles_post_ra>
// kernel: tpu_custom_call.1
= control target key start
LH: loop header
LB: loop body
LE: loop exit
PB: predicated region body
PF: predicated region fallthrough
CT: control target
= control target key end

     0   :  { %9 = vsyncpa [#allocation5], 0  ;;  %s299_s0 = inlined_call_operand.<no memory space> [shape: s32[1], index: 0, kind: input, shape index: {}]   ;;  %s300_s1 = inlined_call_operand.hbm [shape: f32[8,2,128], index: 1, kind: input, shape index: {}]   ;;  %s301_s2 = inlined_call_operand.hbm [shape: f32[8,1,128], index: 2, kind: input, shape index: {}]   ;;  %s302_s3 = inlined_call_operand.hbm [shape: f32[8,2,128], index: 3, kind: output, shape index: {}]  }
   0x1   :  { %10 = vsyncpa [#allocation8], 0 }
   0x2   :  { %11 = vsyncpa [#allocation6], 0  ;;  %s227_s12 = smov [#allocation4]   ;;  %s155_s16 = scalar_lea.hbm %s300_s1, 256 }
   0x3   :  { %s17_s13 = sshll.u32 %s227_s12, 4  ;;  %p156_p0 = scmp.ne.s32.totalorder %s300_s1, %s155_s16  ;;  %s18_s13 = int_to_ptr.vmem [resolvable:$true] %s17_s13 }
   0x4   :  { %p159_p1 = scmp.lt.u32.totalorder %s155_s16, %s300_s1 }
   0x6   :  { %p161_p2 = pnand %p159_p1, %p156_p0 }
   0x8   :  { %164 = shalt.err (!%p161_p2)
}
   0x9   :  { %s165_s20 = scalar_lea.vmem %s18_s13, 256  ;;  %p170_p4 = scmp.lt.s32.totalorder %s18_s13, %s18_s13 }
   0xa   :  { %p166_p3 = scmp.ne.s32.totalorder %s18_s13, %s165_s20  ;;  %p171_p5 = scmp.lt.s32.totalorder %s165_s20, %s165_s20 }
   0xc   :  { %p172_p6 = por %p171_p5, %p170_p4 }
   0xe   :  { %p173_p7 = pnand %p172_p6, %p166_p3 }
  0x10   :  { %176 = shalt.err (!%p173_p7)
}
  0x11   :  { %s228_s21 = smov 32   ;;  %s229_s22 = smov 2  }
  0x12   :  { %23 = dma.hbm_to_vmem [thread:$0]  %s300_s1, 256, %s18_s13, [#allocation5], %s228_s21, %s228_s21, %s229_s22  }
  0x13   :  { %s230_s25 = smov [#allocation7]   ;;  %s177_s29 = scalar_lea.hbm %s301_s2, 128 }
  0x14   :  { %s29_s26 = sshll.u32 %s230_s25, 4  ;;  %p178_p8 = scmp.ne.s32.totalorder %s301_s2, %s177_s29  ;;  %s30_s26 = int_to_ptr.vmem [resolvable:$true] %s29_s26 }
  0x15   :  { %p181_p9 = scmp.lt.u32.totalorder %s177_s29, %s301_s2 }
  0x17   :  { %p183_p10 = pnand %p181_p9, %p178_p8 }
  0x19   :  { %186 = shalt.err (!%p183_p10)
}
  0x1a   :  { %s187_s7 = scalar_lea.vmem %s30_s26, 128  ;;  %p192_p12 = scmp.lt.s32.totalorder %s30_s26, %s30_s26 }
  0x1b   :  { %p188_p11 = scmp.ne.s32.totalorder %s30_s26, %s187_s7  ;;  %p193_p13 = scmp.lt.s32.totalorder %s187_s7, %s187_s7 }
  0x1d   :  { %p194_p0 = por %p193_p13, %p192_p12 }
  0x1f   :  { %p195_p1 = pnand %p194_p0, %p188_p11 }
  0x21   :  { %198 = shalt.err (!%p195_p1)
}
  0x22   :  { %s231_s1 = smov 16   ;;  %s232_s8 = smov 1  }
  0x23   :  { %35 = dma.hbm_to_vmem [thread:$0]  %s301_s2, 128, %s30_s26, [#allocation8], %s231_s1, %s231_s1, %s232_s8  }
  0x24   :  { %221 = dma.done.wait [#allocation5], 256  }
  0x25   :  { %222 = vsyncadd [#allocation5], 4294967040 }
  0x26   :  { %223 = dma.done.wait [#allocation8], 128  }
  0x27   :  { %224 = vsyncadd [#allocation8], 4294967168  ;;  %s233_s11 = smov [#allocation9]   ;;  %v42_v0 = vld [vmem:[#allocation4] sm:$0x3] }
  0x28   :  { %s281_s12 = sshll.u32 %s233_s11, 4  ;;  %v140_v1 = vld [vmem:[#allocation7] ss:$0 sm:$0xff]  ;;  %v43_v2 = vld [vmem:[#allocation4 + $0x2] sm:$0x3]  ;;  %s128_s12 = int_to_ptr.vmem [resolvable:$true] %s281_s12 }
  0x29   :  { %v106_v3 = vadd.f32 %v140_v1, %v42_v0  ;;  %v141_v4 = vld [vmem:[#allocation7 + $0x1] ss:$0 sm:$0xff]  ;;  %v44_v5 = vld [vmem:[#allocation4 + $0x4] sm:$0x3]  ;;  %v142_v6 = vld [vmem:[#allocation7 + $0x2] ss:$0 sm:$0xff]  ;;  %p204_p3 = scmp.lt.s32.totalorder %s128_s12, %s128_s12 }
  0x2a   :  { %v107_v7 = vadd.f32 %v141_v4, %v43_v2  ;;  %v108_v8 = vadd.f32 %v142_v6, %v44_v5  ;;  %v45_v9 = vld [vmem:[#allocation4 + $0x6] sm:$0x3]  ;;  %v143_v10 = vld [vmem:[#allocation7 + $0x3] ss:$0 sm:$0xff]  ;;  %v46_v11 = vld [vmem:[#allocation4 + $0x8] sm:$0x3] }
  0x2b   :  { %114 = vst [vmem:[#allocation9] sm:$0x3] %v106_v3  ;;  %v109_v12 = vadd.f32 %v143_v10, %v45_v9  ;;  %v144_v13 = vld [vmem:[#allocation7 + $0x4] ss:$0 sm:$0xff]  ;;  %v47_v14 = vld [vmem:[#allocation4 + $0xa] sm:$0x3] }
  0x2c   :  { %v145_v15 = vld [vmem:[#allocation7 + $0x5] ss:$0 sm:$0xff]  ;;  %115 = vst [vmem:[#allocation9 + $0x2] sm:$0x3] %v107_v7  ;;  %116 = vst [vmem:[#allocation9 + $0x4] sm:$0x3] %v108_v8  ;;  %v110_v16 = vadd.f32 %v144_v13, %v46_v11 }
  0x2d   :  { %v111_v17 = vadd.f32 %v145_v15, %v47_v14  ;;  %v48_v18 = vld [vmem:[#allocation4 + $0xc] sm:$0x3]  ;;  %v146_v19 = vld [vmem:[#allocation7 + $0x6] ss:$0 sm:$0xff]  ;;  %v49_v20 = vld [vmem:[#allocation4 + $0xe] sm:$0x3] }
  0x2e   :  { %117 = vst [vmem:[#allocation9 + $0x6] sm:$0x3] %v109_v12  ;;  %v112_v21 = vadd.f32 %v146_v19, %v48_v18  ;;  %v147_v22 = vld [vmem:[#allocation7 + $0x7] ss:$0 sm:$0xff]  ;;  %118 = vst [vmem:[#allocation9 + $0x8] sm:$0x3] %v110_v16 }
  0x2f   :  { %119 = vst [vmem:[#allocation9 + $0xa] sm:$0x3] %v111_v17  ;;  %v113_v23 = vadd.f32 %v147_v22, %v49_v20  ;;  %s199_s2 = scalar_lea.vmem %s128_s12, 256 }
  0x30   :  { %120 = vst [vmem:[#allocation9 + $0xc] sm:$0x3] %v112_v21  ;;  %p200_p2 = scmp.ne.s32.totalorder %s128_s12, %s199_s2  ;;  %p205_p4 = scmp.lt.s32.totalorder %s199_s2, %s199_s2 }
  0x31   :  { %121 = vst [vmem:[#allocation9 + $0xe] sm:$0x3] %v113_v23 }
  0x32   :  { %p206_p5 = por %p205_p4, %p204_p3 }
  0x34   :  { %p207_p6 = pnand %p206_p5, %p200_p2 }
  0x36   :  { %210 = shalt.err (!%p207_p6)
}
  0x37   :  { %s211_s15 = scalar_lea.hbm %s302_s3, 256 }
  0x38   :  { %p212_p7 = scmp.ne.s32.totalorder %s302_s3, %s211_s15  ;;  %p215_p8 = scmp.lt.u32.totalorder %s211_s15, %s302_s3 }
  0x3a   :  { %p217_p9 = pnand %p215_p8, %p212_p7 }
  0x3c   :  { %220 = shalt.err (!%p217_p9)
}
  0x3d   :  { %133 = dma.vmem_to_hbm [thread:$0]  %s128_s12, 256, %s302_s3, [#allocation6], %s228_s21, %s228_s21, %s229_s22  }
  0x3e   :  { %225 = dma.done.wait [#allocation6], 256  }
  0x3f   :  { %226 = vsyncadd [#allocation6], 4294967040 }
  0x40   :  { %137 = vsyncpa [#allocation5], 1 }
  0x41   :  { %138 = vsyncpa [#allocation8], 1 }
  0x42   :  { %139 = vsyncpa [#allocation6], 1 }

</bundles_post_ra>
